<compile_context>
chip_gen: v7x
topology: tpu7x:2x2x1
jax: 0.10.0
libtpu: 0.0.40
codegen_flags: <defaults>
</compile_context>

<pallas_src>
import functools

import jax
import jax.numpy as jnp
from jax.experimental import pallas as pl
from jax.experimental.pallas import tpu as pltpu


# ----------------------------------------------------------------------------
# Kernels
# ----------------------------------------------------------------------------

def _bn_fused_kernel(x_ref, gamma_ref, beta_ref, o_ref, *, eps, inv_n):
    """Whole batch resident: fused statistics + normalization for one lane tile.

    x_ref: (N, TF); gamma_ref / beta_ref: (1, TF) f32. All math in f32, only the
    final store casts to the output dtype. Centered two-pass variance.
    """
    xf = x_ref[...].astype(jnp.float32)
    mean = jnp.sum(xf, axis=0, keepdims=True) * inv_n            # (1, TF)
    d = xf - mean
    var = jnp.sum(d * d, axis=0, keepdims=True) * inv_n          # biased, centered
    scale = gamma_ref[...] * jax.lax.rsqrt(var + eps)            # (1, TF)
    o_ref[...] = (d * scale + beta_ref[...]).astype(o_ref.dtype)


def _bn_stats_kernel(x_ref, gamma_ref, beta_ref, scale_ref, shift_ref,
                     sum_ref, ssq_ref, *, eps, inv_n, n_rows, tn):
    """Batch-split pass 1: accumulate per-column sum / sum-of-squares.

    grid = (feature tiles, batch tiles), batch innermost ("arbitrary").
    Emits scale = gamma * inv_std and shift = beta - mean * scale, shape (1, F).
    """
    b = pl.program_id(1)

    @pl.when(b == 0)
    def _():
        sum_ref[...] = jnp.zeros_like(sum_ref)
        ssq_ref[...] = jnp.zeros_like(ssq_ref)

    xf = x_ref[...].astype(jnp.float32)
    # Rows past n_rows on the (possibly partial) last batch tile hold stale
    # VMEM; zero them so they cannot contaminate the column statistics.
    row = jax.lax.broadcasted_iota(jnp.int32, xf.shape, 0) + b * tn
    xf = jnp.where(row < n_rows, xf, 0.0)

    sum_ref[...] += jnp.sum(xf, axis=0, keepdims=True)
    ssq_ref[...] += jnp.sum(xf * xf, axis=0, keepdims=True)

    @pl.when(b == pl.num_programs(1) - 1)
    def _():
        mean = sum_ref[...] * inv_n
        # Single-pass form on this path; clamp to avoid rsqrt(negative) from
        # f32 cancellation when |mean| >> std.
        var = jnp.maximum(ssq_ref[...] * inv_n - mean * mean, 0.0)
        scale = gamma_ref[...] * jax.lax.rsqrt(var + eps)
        scale_ref[...] = scale
        shift_ref[...] = beta_ref[...] - mean * scale


def _bn_apply_kernel(x_ref, scale_ref, shift_ref, o_ref):
    """Batch-split pass 2: out = x * scale + shift (fully parallel tiles)."""
    o_ref[...] = (x_ref[...].astype(jnp.float32) * scale_ref[...]
                  + shift_ref[...]).astype(o_ref.dtype)


# ----------------------------------------------------------------------------
# Tiling / wrapper
# ----------------------------------------------------------------------------

def _vmem_budget_bytes():
    """Device-aware VMEM limit: ~50 MiB on v7x (64 MiB physical), ~100 MiB on
    v5e/v6e (128 MiB physical)."""
    try:
        cap = int(pltpu.get_tpu_info().vmem_capacity_bytes)
    except Exception:
        cap = 64 * 1024 * 1024  # conservative fallback (v7x-sized)
    return int(min(100 * 1024 * 1024, (cap * 25) // 32))


def batchnorm_forward(x, gamma, beta, eps, *, force_batch_split=False):
    n, f = x.shape
    out_dtype = x.dtype
    itemsize = jnp.dtype(x.dtype).itemsize

    vmem_limit = _vmem_budget_bytes()
    # ~24 B/element for f32 (double-buffered in + out plus f32 temporaries),
    # ~16 B/element for bf16.
    bytes_per_elem = 4 * itemsize + 8
    budget_elems = max(1, vmem_limit // bytes_per_elem)

    gamma2d = gamma.astype(jnp.float32).reshape(1, f)
    beta2d = beta.astype(jnp.float32).reshape(1, f)

    f128 = pl.cdiv(f, 128)            # feature extent in 128-lane units
    inv_n = 1.0 / float(n)
    eps = float(eps)

    fused_ok = (budget_elems // n) >= 128 and not force_batch_split

    if fused_ok:
        # ---- whole batch resident; tile only the (lane) feature axis ----
        tf_budget = (budget_elems // n) // 128 * 128
        if f <= 128:
            tf = f                    # single tile; block dim == full array dim
        else:
            tf = min(tf_budget, f128 * 128)
            if pl.cdiv(f, tf) == 1 and f128 >= 2:
                # >= 2 feature tiles so the "parallel" axis can span both
                # TensorCores on v7x (harmless on single-TC chips).
                tf = pl.cdiv(f128, 2) * 128
        n_tiles = pl.cdiv(f, tf)

        kernel = functools.partial(_bn_fused_kernel, eps=eps, inv_n=inv_n)
        return pl.pallas_call(
            kernel,
            out_shape=jax.ShapeDtypeStruct((n, f), out_dtype),
            grid_spec=pltpu.PrefetchScalarGridSpec(
                num_scalar_prefetch=0,
                grid=(n_tiles,),
                in_specs=[
                    pl.BlockSpec((n, tf), lambda j: (0, j)),
                    pl.BlockSpec((1, tf), lambda j: (0, j)),
                    pl.BlockSpec((1, tf), lambda j: (0, j)),
                ],
                out_specs=pl.BlockSpec((n, tf), lambda j: (0, j)),
            ),
            compiler_params=pltpu.CompilerParams(
                dimension_semantics=("parallel",),
                vmem_limit_bytes=vmem_limit,
            ),
        )(x, gamma2d, beta2d)

    # ---- large batch: split the batch axis; two passes over x ----
    if f <= 128:
        tf = f
    else:
        tf = min(f128 * 128, 1024)
    if force_batch_split:
        tn = max(8, min(256, (n // 4) // 8 * 8))
    else:
        tn = max(8, (budget_elems // tf) // 8 * 8)
    tn = min(tn, pl.cdiv(n, 8) * 8)
    n_ftiles = pl.cdiv(f, tf)
    n_btiles = pl.cdiv(n, tn)

    stats_kernel = functools.partial(
        _bn_stats_kernel, eps=eps, inv_n=inv_n, n_rows=n, tn=tn)
    scale, shift = pl.pallas_call(
        stats_kernel,
        out_shape=(jax.ShapeDtypeStruct((1, f), jnp.float32),
                   jax.ShapeDtypeStruct((1, f), jnp.float32)),
        grid_spec=pltpu.PrefetchScalarGridSpec(
            num_scalar_prefetch=0,
            grid=(n_ftiles, n_btiles),
            in_specs=[
                pl.BlockSpec((tn, tf), lambda j, b: (b, j)),
                pl.BlockSpec((1, tf), lambda j, b: (0, j)),
                pl.BlockSpec((1, tf), lambda j, b: (0, j)),
            ],
            out_specs=(
                pl.BlockSpec((1, tf), lambda j, b: (0, j)),
                pl.BlockSpec((1, tf), lambda j, b: (0, j)),
            ),
            scratch_shapes=[pltpu.VMEM((1, tf), jnp.float32),
                            pltpu.VMEM((1, tf), jnp.float32)],
        ),
        compiler_params=pltpu.CompilerParams(
            dimension_semantics=("parallel", "arbitrary"),
            vmem_limit_bytes=vmem_limit,
        ),
    )(x, gamma2d, beta2d)

    return pl.pallas_call(
        _bn_apply_kernel,
        out_shape=jax.ShapeDtypeStruct((n, f), out_dtype),
        grid_spec=pltpu.PrefetchScalarGridSpec(
            num_scalar_prefetch=0,
            grid=(n_btiles, n_ftiles),
            in_specs=[
                pl.BlockSpec((tn, tf), lambda i, j: (i, j)),
                pl.BlockSpec((1, tf), lambda i, j: (0, j)),
                pl.BlockSpec((1, tf), lambda i, j: (0, j)),
            ],
            out_specs=pl.BlockSpec((tn, tf), lambda i, j: (i, j)),
        ),
        compiler_params=pltpu.CompilerParams(
            dimension_semantics=("parallel", "parallel"),
            vmem_limit_bytes=vmem_limit,
        ),
    )(x, scale, shift)


class CustomBatchNormManual:
    """JAX/Pallas counterpart of the PyTorch CustomBatchNormManualModule."""

    def __init__(self, n_neurons, eps=1e-5):
        self.n_neurons = int(n_neurons)
        self.eps = float(eps)
        # Same init as the PyTorch module: gamma = ones, beta = zeros.
        self.gamma = jnp.ones((self.n_neurons,), dtype=jnp.float32)
        self.beta = jnp.zeros((self.n_neurons,), dtype=jnp.float32)

    def __call__(self, x):
        shape = x.shape
        if len(shape) == 1:
            x = x[None, :]
            shape = x.shape
        elif len(shape) > 2:
            raise ValueError(
                f"Expected 2D input. Instead, got {len(shape)}D input with shape of {shape}."
            )
        if shape[1] != self.gamma.shape[0]:
            raise ValueError(
                f"Expected input of shape batch_size x {self.gamma.shape[0]}. "
                f"Instead, got input withshape of {shape}."
            )
        return batchnorm_forward(x, self.gamma, self.beta, self.eps)


def _reference_batchnorm(x, gamma, beta, eps):
    mean = x.mean(axis=0)
    var = x.var(axis=0)  # biased, matches unbiased=False
    inv_std = 1.0 / jnp.sqrt(var + eps)
    return gamma * (x - mean) * inv_std + beta


# TODO(synk): the PyTorch autograd backward pass is not implemented here (only
# the forward semantics of the module are translated).

if __name__ == "__main__":
    key = jax.random.PRNGKey(0)
    k1, k2, k3, k4, k5 = jax.random.split(key, 5)

    # --- Test 1: small MLP shape, F < 128 (single tile, no pad round-trip) ---
    n1, f1 = 8, 32
    x1 = jax.random.normal(k1, (n1, f1), dtype=jnp.float32) * 2.0 + 1.5
    m1 = CustomBatchNormManual(f1, eps=1e-5)
    o1 = jax.block_until_ready(m1(x1))
    r1 = _reference_batchnorm(x1, m1.gamma, m1.beta, m1.eps)
    assert o1.shape == (n1, f1)
    assert jnp.allclose(o1, r1, atol=1e-5, rtol=1e-5), "mismatch vs reference (test 1)"

    # --- Test 2: F = 384 -> two feature tiles (parallel axis), partial last tile ---
    n2, f2 = 16, 384
    x2 = jax.random.normal(k2, (n2, f2), dtype=jnp.float32) * 3.0 - 0.5
    m2 = CustomBatchNormManual(f2, eps=1e-5)
    m2.gamma = jax.random.normal(k3, (f2,), dtype=jnp.float32) * 0.5 + 1.0
    m2.beta = jax.random.normal(k4, (f2,), dtype=jnp.float32)
    o2 = jax.block_until_ready(m2(x2))
    r2 = _reference_batchnorm(x2, m2.gamma, m2.beta, m2.eps)
    assert o2.shape == (n2, f2)
    assert jnp.allclose(o2, r2, atol=1e-5, rtol=1e-5), "mismatch vs reference (test 2)"

    # --- Test 3: batch-split (large-N) path, forced at a small shape;
    #     F not a multiple of 128 and N not a multiple of the batch tile. ---
    n3, f3 = 72, 160
    x3 = jax.random.normal(k5, (n3, f3), dtype=jnp.float32) * 1.7 + 0.3
    g3 = jnp.linspace(0.5, 1.5, f3, dtype=jnp.float32)
    b3 = jnp.linspace(-1.0, 1.0, f3, dtype=jnp.float32)
    o3 = jax.block_until_ready(
        batchnorm_forward(x3, g3, b3, 1e-5, force_batch_split=True))
    r3 = _reference_batchnorm(x3, g3, b3, 1e-5)
    assert o3.shape == (n3, f3)
    assert jnp.allclose(o3, r3, atol=1e-4, rtol=1e-4), "mismatch vs reference (test 3)"

    print("KERNEL_OK")
</pallas_src>

<mosaic_0001>
module attributes {stable_mosaic.version = 11 : i64} {
  func.func @_bn_fused_kernel(%arg0: i32, %arg1: memref<8x32xf32, #tpu.memory_space<vmem>>, %arg2: memref<1x32xf32, #tpu.memory_space<vmem>>, %arg3: memref<1x32xf32, #tpu.memory_space<vmem>>, %arg4: memref<8x32xf32, #tpu.memory_space<vmem>>) attributes {dimension_semantics = [#tpu.dimension_semantics<parallel>], iteration_bounds = array<i64: 1>, scalar_prefetch = 0 : i64, scratch_operands = 0 : i64, tpu.core_type = #tpu.core_type<tc>, window_params = [{transform_indices = @transform_0, window_bounds = array<i64: 8, 32>}, {transform_indices = @transform_1, window_bounds = array<i64: 1, 32>}, {transform_indices = @transform_2, window_bounds = array<i64: 1, 32>}, {transform_indices = @transform_3, window_bounds = array<i64: 8, 32>}]} {
    %c0 = arith.constant 0 : index
    %c0_0 = arith.constant 0 : index
    %0 = vector.load %arg1[%c0, %c0_0] : memref<8x32xf32, #tpu.memory_space<vmem>>, vector<8x32xf32>
    %cst = arith.constant dense<0.000000e+00> : vector<32xf32>
    %1 = vector.multi_reduction <add>, %0, %cst [0] : vector<8x32xf32> to vector<32xf32>
    %2 = vector.shape_cast %1 : vector<32xf32> to vector<1x32xf32>
    %cst_1 = arith.constant 1.250000e-01 : f32
    %3 = vector.broadcast %cst_1 : f32 to vector<1x32xf32>
    %4 = arith.mulf %2, %3 : vector<1x32xf32>
    %5 = vector.broadcast %4 : vector<1x32xf32> to vector<8x32xf32>
    %6 = arith.subf %0, %5 : vector<8x32xf32>
    %7 = arith.mulf %6, %6 : vector<8x32xf32>
    %cst_2 = arith.constant dense<0.000000e+00> : vector<32xf32>
    %8 = vector.multi_reduction <add>, %7, %cst_2 [0] : vector<8x32xf32> to vector<32xf32>
    %9 = vector.shape_cast %8 : vector<32xf32> to vector<1x32xf32>
    %cst_3 = arith.constant 1.250000e-01 : f32
    %10 = vector.broadcast %cst_3 : f32 to vector<1x32xf32>
    %11 = arith.mulf %9, %10 : vector<1x32xf32>
    %c0_4 = arith.constant 0 : index
    %c0_5 = arith.constant 0 : index
    %12 = vector.load %arg2[%c0_4, %c0_5] : memref<1x32xf32, #tpu.memory_space<vmem>>, vector<1x32xf32>
    %cst_6 = arith.constant 9.99999974E-6 : f32
    %13 = vector.broadcast %cst_6 : f32 to vector<1x32xf32>
    %14 = arith.addf %11, %13 : vector<1x32xf32>
    %15 = math.rsqrt %14 : vector<1x32xf32>
    %16 = arith.mulf %12, %15 : vector<1x32xf32>
    %17 = vector.broadcast %16 : vector<1x32xf32> to vector<8x32xf32>
    %18 = arith.mulf %6, %17 : vector<8x32xf32>
    %c0_7 = arith.constant 0 : index
    %c0_8 = arith.constant 0 : index
    %19 = vector.load %arg3[%c0_7, %c0_8] : memref<1x32xf32, #tpu.memory_space<vmem>>, vector<1x32xf32>
    %20 = vector.broadcast %19 : vector<1x32xf32> to vector<8x32xf32>
    %21 = arith.addf %18, %20 : vector<8x32xf32>
    %c0_9 = arith.constant 0 : index
    %c0_10 = arith.constant 0 : index
    %22 = vector.load %arg4[%c0_9, %c0_10] : memref<8x32xf32, #tpu.memory_space<vmem>>, vector<8x32xf32>
    tpu.vector_store %arg4[%c0_9, %c0_10], %21 {strides = array<i32>} : memref<8x32xf32, #tpu.memory_space<vmem>>, vector<8x32xf32>,
    return
  }
  func.func @transform_0(%arg0: i32) -> (i32, i32) {
    %c0_i32 = arith.constant 0 : i32
    %c0_i32_0 = arith.constant 0 : i32
    return %c0_i32, %arg0 : i32, i32
  }
  func.func @transform_1(%arg0: i32) -> (i32, i32) {
    %c0_i32 = arith.constant 0 : i32
    %c0_i32_0 = arith.constant 0 : i32
    return %c0_i32, %arg0 : i32, i32
  }
  func.func @transform_2(%arg0: i32) -> (i32, i32) {
    %c0_i32 = arith.constant 0 : i32
    %c0_i32_0 = arith.constant 0 : i32
    return %c0_i32, %arg0 : i32, i32
  }
  func.func @transform_3(%arg0: i32) -> (i32, i32) {
    %c0_i32 = arith.constant 0 : i32
    %c0_i32_0 = arith.constant 0 : i32
    return %c0_i32, %arg0 : i32, i32
  }
}

</mosaic_0001>

<bundles_post_ra>
// kernel: tpu_custom_call.1
= control target key start
LH: loop header
LB: loop body
LE: loop exit
PB: predicated region body
PF: predicated region fallthrough
CT: control target
= control target key end

     0   :  { %8 = vsyncpa [#allocation3], 0  ;;  %s190_s0 = inlined_call_operand.hbm [shape: f32[8,32], index: 0, kind: input, shape index: {}]   ;;  %s191_s1 = inlined_call_operand.vmem [shape: f32[1,32], index: 1, kind: input, shape index: {}]   ;;  %s192_s2 = inlined_call_operand.vmem [shape: f32[1,32], index: 2, kind: input, shape index: {}]   ;;  %s193_s3 = inlined_call_operand.hbm [shape: f32[8,32], index: 3, kind: output, shape index: {}]  }
   0x1   :  { %9 = vsyncpa [#allocation4], 0  ;;  %s135_s12 = smov [#allocation2]   ;;  %s87_s16 = scalar_lea.hbm %s190_s0, 128 }
   0x2   :  { %s16_s13 = sshll.u32 %s135_s12, 4  ;;  %p88_p0 = scmp.ne.s32.totalorder %s190_s0, %s87_s16  ;;  %s17_s13 = int_to_ptr.vmem [resolvable:$true] %s16_s13 }
   0x3   :  { %p91_p1 = scmp.lt.u32.totalorder %s87_s16, %s190_s0 }
   0x5   :  { %p93_p2 = pnand %p91_p1, %p88_p0 }
   0x7   :  { %96 = shalt.err (!%p93_p2)
}
   0x8   :  { %s97_s21 = scalar_lea.vmem %s17_s13, 128  ;;  %p102_p4 = scmp.lt.s32.totalorder %s17_s13, %s17_s13 }
   0x9   :  { %p98_p3 = scmp.ne.s32.totalorder %s17_s13, %s97_s21  ;;  %p103_p5 = scmp.lt.s32.totalorder %s97_s21, %s97_s21 }
   0xb   :  { %p104_p6 = por %p103_p5, %p102_p4 }
   0xd   :  { %p105_p7 = pnand %p104_p6, %p98_p3 }
   0xf   :  { %108 = shalt.err (!%p105_p7)
}
  0x10   :  { %19 = dma.hbm_to_vmem [thread:$0]  %s190_s0, 128, %s17_s13, [#allocation3]  }
  0x11   :  { %131 = dma.done.wait [#allocation3], 128  }
  0x12   :  { %132 = vsyncadd [#allocation3], 4294967168  ;;  %vm28_vm0 = vcmask 261120   ;;  %v27_v0 = vld [vmem:[#allocation2] sm:$0xff]  ;;  %v52_v20 = vlaneseq  ;;  %s136_s27 = smov [#allocation5]  }
  0x13   :  { %v29_v1 = vsel %vm28_vm0, %v27_v0, 0.0  ;;  %v47_v22 = vld [vmem:[%s191_s1] sm:$0x1]  ;;  %s73_s28 = sshll.u32 %s136_s27, 4  ;;  %s74_s28 = int_to_ptr.vmem [resolvable:$true] %s73_s28 }
  0x14   :  { %v30_v2 = vrot.slane %v29_v1, 4  ;;  %v53_v21 = vshrl.u32 %v52_v20, 7  ;;  %v82_v27 = vld [vmem:[%s192_s2] ss:$0 sm:$0xff]  ;;  %s109_s29 = scalar_lea.vmem %s74_s28, 128  ;;  %p114_p9 = scmp.lt.s32.totalorder %s74_s28, %s74_s28 }
  0x15   :  { %p110_p8 = scmp.ne.s32.totalorder %s74_s28, %s109_s29  ;;  %p115_p10 = scmp.lt.s32.totalorder %s109_s29, %s109_s29 }
  0x16   :  { %v31_v3 = vadd.f32 %v30_v2, %v29_v1  ;;  %v54_v23 = vsub.s32 0, %v53_v21 }
  0x17   :  { %p116_p11 = por %p115_p10, %p114_p9 }
  0x18   :  { %v32_v4 = vrot.slane %v31_v3, 2 }
  0x19   :  { %p117_p12 = pnand %p116_p11, %p110_p8 }
  0x1a   :  { %v33_v5 = vadd.f32 %v32_v4, %v31_v3 }
  0x1c   :  { %v34_v6 = vrot.slane %v33_v5, 1 }
  0x1e   :  { %v35_v7 = vadd.f32 %v34_v6, %v33_v5 }
  0x20   :  { %v36_v8 = vmul.f32 0.125, %v35_v7 }
  0x22   :  { %v37_v9 = vsub.f32 %v27_v0, %v36_v8 }
  0x24   :  { %v38_v10 = vmul.f32 %v37_v9, %v37_v9 }
  0x26   :  { %v39_v11 = vsel %vm28_vm0, %v38_v10, 0.0 }
  0x27   :  { %v40_v12 = vrot.slane %v39_v11, 4 }
  0x29   :  { %v41_v13 = vadd.f32 %v40_v12, %v39_v11 }
  0x2b   :  { %v42_v14 = vrot.slane %v41_v13, 2 }
  0x2d   :  { %v43_v15 = vadd.f32 %v42_v14, %v41_v13 }
  0x2f   :  { %v44_v16 = vrot.slane %v43_v15, 1 }
  0x31   :  { %v45_v17 = vadd.f32 %v44_v16, %v43_v15 }
  0x33   :  { %v46_v18 = vmul.f32 0.125, %v45_v17 }
  0x35   :  { %v48_v19 = vadd.f32 1e-05, %v46_v18 }
  0x37   :  { %85 = vrsqrt.f32 %v48_v19 }
  0x41   :  { %v86_v24 = vpop.eup %85 }
  0x42   :  { %v50_v25 = vmul.f32 %v86_v24, %v47_v22 }
  0x44   :  { %v55_v26 = vrot.slane %v50_v25, %v54_v23 }
  0x46   :  { %v57_v28 = vmul.f32 %v55_v26, %v37_v9 }
  0x48   :  { %v65_v29 = vadd.f32 %v82_v27, %v57_v28 }
  0x4a   :  { %66 = vst.msk [vmem:[#allocation5] sm:$0xff] %vm28_vm0, %v65_v29 }
  0x4b   :  { %120 = shalt.err (!%p117_p12)
}
  0x4c   :  { %s121_s4 = scalar_lea.hbm %s193_s3, 128 }
  0x4d   :  { %p122_p13 = scmp.ne.s32.totalorder %s193_s3, %s121_s4  ;;  %p125_p0 = scmp.lt.u32.totalorder %s121_s4, %s193_s3 }
  0x4f   :  { %p127_p1 = pnand %p125_p0, %p122_p13 }
  0x51   :  { %130 = shalt.err (!%p127_p1)
}
  0x52   :  { %76 = dma.vmem_to_hbm [thread:$0]  %s74_s28, 128, %s193_s3, [#allocation4]  }
  0x53   :  { %133 = dma.done.wait [#allocation4], 128  }
  0x54   :  { %134 = vsyncadd [#allocation4], 4294967168 }
  0x55   :  { %80 = vsyncpa [#allocation3], 1 }
  0x56   :  { %81 = vsyncpa [#allocation4], 1 }

</bundles_post_ra>
